<compile_context>
chip_gen: v7x
topology: tpu7x:2x2x1
jax: 0.10.0
libtpu: 0.0.40
codegen_flags: <defaults>
</compile_context>

<pallas_src>
import functools

import jax
import jax.numpy as jnp
from jax.experimental import pallas as pl
from jax.experimental.pallas import tpu as pltpu


_VMEM_LIMIT_BYTES = 32 * 1024 * 1024   # safe on v5e/v6e/v7x (v7x physical = 64 MiB)
_TILE_BUDGET_BYTES = 16 * 1024 * 1024  # double-buffered working set, leaves headroom


def _sublane(itemsize: int) -> int:
    # f32 -> 8 rows/vreg, bf16 -> 16, int8/fp8 -> 32.
    return 8 * max(1, 4 // max(1, itemsize))


def _round_up(x: int, m: int) -> int:
    return ((x + m - 1) // m) * m


def _row_tile(rows: int, bytes_per_row: int, sub: int,
              *, max_rows: int = 2048, min_steps: int = 4) -> int:
    """Row-tile from a byte budget, capped so the row grid has >= min_steps steps."""
    tr = max(sub, _TILE_BUDGET_BYTES // max(1, bytes_per_row))
    tr = min(tr, max_rows, _round_up(rows, sub))
    if rows > min_steps * sub:
        # Guarantee several grid steps: pipeline overlap + v7x 2-TC sharding.
        tr = min(tr, _round_up(pl.cdiv(rows, min_steps), sub))
    tr = max(sub, (tr // sub) * sub)
    return tr


def _compute_dtype(x_dtype) -> jnp.dtype:
    """Native low-precision gating on chips with bf16 VPU/EUP (v6e+), f32 otherwise."""
    if jnp.dtype(x_dtype) == jnp.dtype(jnp.float32):
        return jnp.float32
    try:
        kind = jax.devices()[0].device_kind.lower()
    except Exception:
        kind = ""
    old_chip = any(tag in kind for tag in ("v2", "v3", "v4", "v5"))
    return jnp.float32 if old_chip else jnp.dtype(x_dtype)


def _glu_fused_kernel(x_ref, o_ref, *, split, compute_dtype):
    # Full-width row tile; split inside the kernel. When `split` is a multiple
    # of 128 the lane slice is a free view (no relayout).
    x = x_ref[...]
    a = x[:, :split].astype(compute_dtype)
    b = x[:, split:].astype(compute_dtype)
    o_ref[...] = (a * jax.nn.sigmoid(b)).astype(o_ref.dtype)


def _glu_split_kernel(a_ref, b_ref, o_ref, *, compute_dtype):
    # Two lane-aligned column-blocked views of the same HBM slab; pure gate.
    a = a_ref[...].astype(compute_dtype)
    b = b_ref[...].astype(compute_dtype)
    o_ref[...] = (a * jax.nn.sigmoid(b)).astype(o_ref.dtype)


def glu(x: jax.Array, dim: int = -1) -> jax.Array:
    """Pallas TPU implementation of nn.GLU(dim=dim)(x)."""
    ndim = x.ndim
    axis = dim % ndim
    if axis != ndim - 1:
        # TODO(synk): express non-last split axes via BlockSpec index_map on the
        # original layout instead of materializing a transpose on both sides.
        x = jnp.moveaxis(x, axis, -1)

    *lead, two_d = x.shape
    if two_d % 2 != 0:
        raise ValueError("GLU split axis must have even size")
    d = two_d // 2

    rows = 1
    for s in lead:
        rows *= s
    x2d = x.reshape(rows, two_d)

    itemsize = jnp.dtype(x.dtype).itemsize
    sub = _sublane(itemsize)
    cdt = _compute_dtype(x.dtype)
    cost = pl.CostEstimate(
        flops=2 * rows * d,
        transcendentals=rows * d,
        bytes_accessed=3 * rows * d * itemsize,  # read a, read b, write out
    )

    if d % 128 == 0 and d <= 4096:
        # Fast path: single contiguous full-width input block, in-kernel split
        # at a 128-aligned lane offset (free view), lane-dense output.
        # Per-row bytes per pipeline slot: input 2d + output d, double-buffered.
        tr = _row_tile(rows, 2 * 3 * d * itemsize, sub)
        grid = (pl.cdiv(rows, tr),)

        out2d = pl.pallas_call(
            functools.partial(_glu_fused_kernel, split=d, compute_dtype=cdt),
            out_shape=jax.ShapeDtypeStruct((rows, d), x.dtype),
            grid_spec=pltpu.PrefetchScalarGridSpec(
                num_scalar_prefetch=0,
                grid=grid,
                in_specs=[pl.BlockSpec((tr, two_d), lambda i: (i, 0))],
                out_specs=pl.BlockSpec((tr, d), lambda i: (i, 0)),
            ),
            compiler_params=pltpu.CompilerParams(
                dimension_semantics=("parallel",),
                vmem_limit_bytes=_VMEM_LIMIT_BYTES,
            ),
            cost_estimate=cost,
        )(x2d)
    elif d % 128 == 0:
        # Wide path (d > 4096): two lane-aligned column-blocked views of the
        # same array. tc = largest multiple-of-128 divisor of d that is <= 2048
        # (128 always divides d, so the search always succeeds).
        tc = 128
        for cand in range(2048, 127, -128):
            if d % cand == 0:
                tc = cand
                break
        ncb = d // tc  # column-block offset of the gate (b) half
        tr = _row_tile(rows, 2 * 3 * tc * itemsize, sub)
        grid = (pl.cdiv(rows, tr), ncb)

        out2d = pl.pallas_call(
            functools.partial(_glu_split_kernel, compute_dtype=cdt),
            out_shape=jax.ShapeDtypeStruct((rows, d), x.dtype),
            grid_spec=pltpu.PrefetchScalarGridSpec(
                num_scalar_prefetch=0,
                grid=grid,
                in_specs=[
                    pl.BlockSpec((tr, tc), lambda i, j: (i, j)),
                    pl.BlockSpec((tr, tc), lambda i, j, _n=ncb: (i, j + _n)),
                ],
                out_specs=pl.BlockSpec((tr, tc), lambda i, j: (i, j)),
            ),
            compiler_params=pltpu.CompilerParams(
                dimension_semantics=("parallel", "parallel"),
                vmem_limit_bytes=_VMEM_LIMIT_BYTES,
            ),
            cost_estimate=cost,
        )(x2d, x2d)
    else:
        # Fallback: non-128-aligned halves. Full-width row tile, split in
        # kernel; halve the row budget to leave room for relayout temporaries
        # (non-lane-aligned slice) and masked partial stores.
        tr = _row_tile(rows, 2 * 2 * 3 * d * itemsize, sub)
        grid = (pl.cdiv(rows, tr),)

        out2d = pl.pallas_call(
            functools.partial(_glu_fused_kernel, split=d, compute_dtype=cdt),
            out_shape=jax.ShapeDtypeStruct((rows, d), x.dtype),
            grid_spec=pltpu.PrefetchScalarGridSpec(
                num_scalar_prefetch=0,
                grid=grid,
                in_specs=[pl.BlockSpec((tr, two_d), lambda i: (i, 0))],
                out_specs=pl.BlockSpec((tr, d), lambda i: (i, 0)),
            ),
            compiler_params=pltpu.CompilerParams(
                dimension_semantics=("parallel",),
                vmem_limit_bytes=_VMEM_LIMIT_BYTES,
            ),
            cost_estimate=cost,
        )(x2d)

    out = out2d.reshape(*lead, d)
    if axis != ndim - 1:
        out = jnp.moveaxis(out, -1, axis)
    return out


if __name__ == "__main__":
    batch, seq = 2, 8

    # 1) Lane-aligned fast path (hidden = 128 -> single contiguous full-width block).
    hidden = 128
    x = jax.random.normal(jax.random.PRNGKey(0), (batch, seq, 2 * hidden), dtype=jnp.float32)
    y = jax.block_until_ready(glu(x, dim=-1))
    a, b = jnp.split(x, 2, axis=-1)
    assert y.shape == (batch, seq, hidden)
    assert jnp.allclose(y, a * jax.nn.sigmoid(b), atol=1e-6, rtol=1e-6)

    # 2) Small-hidden fallback path (hidden = 32, non-128-aligned halves).
    x2 = jax.random.normal(jax.random.PRNGKey(0), (batch, seq, 64), dtype=jnp.float32)
    y2 = jax.block_until_ready(glu(x2, dim=-1))
    a2, b2 = jnp.split(x2, 2, axis=-1)
    assert y2.shape == (batch, seq, 32)
    assert jnp.allclose(y2, a2 * jax.nn.sigmoid(b2), atol=1e-6, rtol=1e-6)

    # 3) Non-last split axis (dim=1), matching nn.GLU(dim=1) semantics.
    x3 = jax.random.normal(jax.random.PRNGKey(0), (batch, 2 * hidden, seq), dtype=jnp.float32)
    y3 = jax.block_until_ready(glu(x3, dim=1))
    a3, b3 = jnp.split(x3, 2, axis=1)
    assert y3.shape == (batch, hidden, seq)
    assert jnp.allclose(y3, a3 * jax.nn.sigmoid(b3), atol=1e-6, rtol=1e-6)

    # 4) bf16 input (native bf16 gating on v6e/v7x, f32 upcast on v5e); loose tolerance.
    xb = jax.random.normal(jax.random.PRNGKey(0), (batch, seq, 2 * hidden)).astype(jnp.bfloat16)
    yb = jax.block_until_ready(glu(xb, dim=-1))
    ab, bb = jnp.split(xb.astype(jnp.float32), 2, axis=-1)
    assert yb.shape == (batch, seq, hidden)
    assert jnp.allclose(yb.astype(jnp.float32), ab * jax.nn.sigmoid(bb), atol=5e-2, rtol=5e-2)

    print("KERNEL_OK")
</pallas_src>

<mosaic_0001>
module attributes {stable_mosaic.version = 11 : i64} {
  func.func @_glu_fused_kernel(%arg0: i32, %arg1: memref<16x256xf32, #tpu.memory_space<vmem>>, %arg2: memref<16x128xf32, #tpu.memory_space<vmem>>) attributes {dimension_semantics = [#tpu.dimension_semantics<parallel>], iteration_bounds = array<i64: 1>, scalar_prefetch = 0 : i64, scratch_operands = 0 : i64, tpu.core_type = #tpu.core_type<tc>, window_params = [{transform_indices = @transform_0, window_bounds = array<i64: 16, 256>}, {transform_indices = @transform_1, window_bounds = array<i64: 16, 128>}]} {
    %c0 = arith.constant 0 : index
    %c0_0 = arith.constant 0 : index
    %0 = vector.load %arg1[%c0, %c0_0] : memref<16x256xf32, #tpu.memory_space<vmem>>, vector<16x256xf32>
    %1 = vector.extract_strided_slice %0 {offsets = [0, 0], sizes = [16, 128], strides = [1, 1]} : vector<16x256xf32> to vector<16x128xf32>
    %2 = vector.extract_strided_slice %0 {offsets = [0, 128], sizes = [16, 128], strides = [1, 1]} : vector<16x256xf32> to vector<16x128xf32>
    %3 = arith.negf %2 : vector<16x128xf32>
    %4 = math.exp %3 : vector<16x128xf32>
    %cst = arith.constant 1.000000e+00 : f32
    %5 = vector.broadcast %cst : f32 to vector<16x128xf32>
    %6 = arith.addf %5, %4 : vector<16x128xf32>
    %7 = arith.divf %5, %6 : vector<16x128xf32>
    %8 = arith.mulf %1, %7 : vector<16x128xf32>
    %c0_1 = arith.constant 0 : index
    %c0_2 = arith.constant 0 : index
    %9 = vector.load %arg2[%c0_1, %c0_2] : memref<16x128xf32, #tpu.memory_space<vmem>>, vector<16x128xf32>
    tpu.vector_store %arg2[%c0_1, %c0_2], %8 {strides = array<i32>} : memref<16x128xf32, #tpu.memory_space<vmem>>, vector<16x128xf32>,
    return
  }
  func.func @transform_0(%arg0: i32) -> (i32, i32) {
    %c0_i32 = arith.constant 0 : i32
    %c0_i32_0 = arith.constant 0 : i32
    return %arg0, %c0_i32 : i32, i32
  }
  func.func @transform_1(%arg0: i32) -> (i32, i32) {
    %c0_i32 = arith.constant 0 : i32
    %c0_i32_0 = arith.constant 0 : i32
    return %arg0, %c0_i32 : i32, i32
  }
}

</mosaic_0001>

<bundles_post_ra>
// kernel: tpu_custom_call.1
= control target key start
LH: loop header
LB: loop body
LE: loop exit
PB: predicated region body
PF: predicated region fallthrough
CT: control target
= control target key end

     0   :  { %6 = vsyncpa [#allocation3], 0  ;;  %s164_s0 = inlined_call_operand.hbm [shape: f32[16,256], index: 0, kind: input, shape index: {}]   ;;  %s165_s1 = inlined_call_operand.hbm [shape: f32[16,128], index: 1, kind: output, shape index: {}]  }
   0x1   :  { %7 = vsyncpa [#allocation4], 0  ;;  %s124_s6 = smov [#allocation2]   ;;  %s76_s10 = scalar_lea.hbm %s164_s0, 512 }
   0x2   :  { %s13_s7 = sshll.u32 %s124_s6, 4  ;;  %p77_p0 = scmp.ne.s32.totalorder %s164_s0, %s76_s10  ;;  %s14_s7 = int_to_ptr.vmem [resolvable:$true] %s13_s7 }
   0x3   :  { %p80_p1 = scmp.lt.u32.totalorder %s76_s10, %s164_s0 }
   0x5   :  { %p82_p2 = pnand %p80_p1, %p77_p0 }
   0x7   :  { %85 = shalt.err (!%p82_p2)
}
   0x8   :  { %s86_s15 = scalar_lea.vmem %s14_s7, 512  ;;  %p91_p4 = scmp.lt.s32.totalorder %s14_s7, %s14_s7 }
   0x9   :  { %p87_p3 = scmp.ne.s32.totalorder %s14_s7, %s86_s15  ;;  %p92_p5 = scmp.lt.s32.totalorder %s86_s15, %s86_s15 }
   0xb   :  { %p93_p6 = por %p92_p5, %p91_p4 }
   0xd   :  { %p94_p7 = pnand %p93_p6, %p87_p3 }
   0xf   :  { %97 = shalt.err (!%p94_p7)
}
  0x10   :  { %s125_s16 = smov 256   ;;  %s126_s17 = smov 16  }
  0x11   :  { %19 = dma.hbm_to_vmem [thread:$0]  %s164_s0, 512, %s14_s7, [#allocation3], %s125_s16, %s125_s16, %s126_s17  }
  0x12   :  { %120 = dma.done.wait [#allocation3], 512  }
  0x13   :  { %121 = vsyncadd [#allocation3], 4294966784  ;;  %v24_v0 = vld [vmem:[#allocation2 + $0x8] sm:$0xff]  ;;  %v26_v2 = vld [vmem:[#allocation2 + $0x18] sm:$0xff]  ;;  %s127_s20 = smov [#allocation5]  }
  0x14   :  { %v60_v1 = vmul.f32 -1.442695, %v24_v0  ;;  %v61_v3 = vmul.f32 -1.442695, %v26_v2  ;;  %v23_v8 = vld [vmem:[#allocation2] sm:$0xff]  ;;  %v25_v9 = vld [vmem:[#allocation2 + $0x10] sm:$0xff] }
  0x15   :  { %s48_s21 = sshll.u32 %s127_s20, 4  ;;  %s49_s21 = int_to_ptr.vmem [resolvable:$true] %s48_s21 }
  0x16   :  { %68 = vpow2.f32 %v60_v1  ;;  %s98_s0 = scalar_lea.vmem %s49_s21, 256  ;;  %p103_p9 = scmp.lt.s32.totalorder %s49_s21, %s49_s21 }
  0x17   :  { %70 = vpow2.f32 %v61_v3  ;;  %p99_p8 = scmp.ne.s32.totalorder %s49_s21, %s98_s0  ;;  %p104_p10 = scmp.lt.s32.totalorder %s98_s0, %s98_s0 }
  0x19   :  { %p105_p11 = por %p104_p10, %p103_p9 }
  0x1b   :  { %p106_p12 = pnand %p105_p11, %p99_p8 }
  0x20   :  { %v69_v4 = vpop.eup %68 }
  0x21   :  { %v71_v5 = vpop.eup %70  ;;  %v33_v6 = vadd.f32 1.0, %v69_v4 }
  0x22   :  { %v34_v7 = vadd.f32 1.0, %v71_v5 }
  0x23   :  { %72 = vrcp.f32 %v33_v6 }
  0x24   :  { %74 = vrcp.f32 %v34_v7 }
  0x2d   :  { %v73_v10 = vpop.eup %72 }
  0x2e   :  { %v75_v11 = vpop.eup %74  ;;  %v39_v12 = vmul.f32 %v73_v10, %v23_v8 }
  0x2f   :  { %v40_v13 = vmul.f32 %v75_v11, %v25_v9 }
  0x30   :  { %41 = vst [vmem:[#allocation5] sm:$0xff] %v39_v12 }
  0x31   :  { %42 = vst [vmem:[#allocation5 + $0x8] sm:$0xff] %v40_v13 }
  0x32   :  { %109 = shalt.err (!%p106_p12)
}
  0x33   :  { %s110_s24 = scalar_lea.hbm %s165_s1, 256 }
  0x34   :  { %p111_p13 = scmp.ne.s32.totalorder %s165_s1, %s110_s24  ;;  %p114_p0 = scmp.lt.u32.totalorder %s110_s24, %s165_s1 }
  0x36   :  { %p116_p1 = pnand %p114_p0, %p111_p13 }
  0x38   :  { %119 = shalt.err (!%p116_p1)
}
  0x39   :  { %s128_s29 = smov 128   ;;  %s129_s30 = smov 8  }
  0x3a   :  { %54 = dma.vmem_to_hbm [thread:$0]  %s49_s21, 256, %s165_s1, [#allocation4], %s128_s29, %s128_s29, %s129_s30  }
  0x3b   :  { %122 = dma.done.wait [#allocation4], 256  }
  0x3c   :  { %123 = vsyncadd [#allocation4], 4294967040 }
  0x3d   :  { %58 = vsyncpa [#allocation3], 1 }
  0x3e   :  { %59 = vsyncpa [#allocation4], 1 }

</bundles_post_ra>
